<compile_context>
chip_gen: v5e
topology: v5e:2x2
jax: 0.10.0
libtpu: 0.0.40
codegen_flags: <defaults>
</compile_context>

<pallas_src>
import functools

import jax
import jax.numpy as jnp
from jax import lax
from jax.experimental import pallas as pl
from jax.experimental.pallas import tpu as pltpu
import numpy as np


def _round_up(x, m):
    return (x + m - 1) // m * m


# ---------------------------------------------------------------------------
# Hoisted packing: run once per graph (structure) / per weight update (params),
# NOT on the per-forward hot path.
# ---------------------------------------------------------------------------
def pack_gcn_structure(in_indices, in_edges, in_mask,
                       out_indices, out_edges, out_mask, num_nodes):
    """Pack gather indices + float masks into ONE transposed int32 slab.

    Returns int32 [2*KK, N] with KK = 4*K:
      rows [0, KK)    : gather targets (node ids in [0,N); edge ids offset +N)
      rows [KK, 2*KK) : f32 masks bitcast to int32
    Stored transposed (contribution axis leading) so the kernel can build its
    one-hot with a VPU axis-0 reduce and needs no in-kernel transpose.
    """
    N = num_nodes
    all_idx = jnp.concatenate(
        [in_indices, out_indices, in_edges + N, out_edges + N],
        axis=1).astype(jnp.int32).T                            # [KK, N]
    all_mask = jnp.concatenate(
        [in_mask, out_mask, in_mask, out_mask],
        axis=1).astype(jnp.float32).T                          # [KK, N]
    mask_bits = lax.bitcast_convert_type(all_mask, jnp.int32)  # exact bits
    return jnp.concatenate([all_idx, mask_bits], axis=0)       # [2*KK, N]


def pack_gcn_params(edge_table, lin_weight, lin_bias):
    """Pack edge-embedding table, Linear weight (transposed, split) and bias
    into one f32 slab [Vpad + 2D + 1, D].  Table rows are zero-padded to a
    multiple of 8 so every section starts sublane-aligned."""
    V, E = edge_table.shape
    D = lin_bias.shape[0]
    assert E == D and lin_weight.shape == (D, 2 * D)
    vpad = _round_up(V, 8)
    table = jnp.zeros((vpad, D), jnp.float32).at[:V].set(
        edge_table.astype(jnp.float32))
    wt = lin_weight.T.astype(jnp.float32)                      # [2D, D]
    return jnp.concatenate(
        [table, wt, lin_bias.reshape(1, D).astype(jnp.float32)], axis=0)


# ---------------------------------------------------------------------------
# Kernel
# ---------------------------------------------------------------------------
def gcn_conv_kernel(struct_ref, node_ref, param_ref, hid_ref, *, agg_dtype):
    TN, D = hid_ref.shape                 # row-block of output
    N = node_ref.shape[0]                 # full graph node count
    P = param_ref.shape[0]
    Vp = P - 2 * D - 1                    # (padded) edge-vocab rows
    KK = struct_ref.shape[0] // 2         # packed contributions per node

    packed = struct_ref[...]                                   # [2*KK, TN] i32
    idx3 = packed[:KK][:, :, None]                             # [KK, TN, 1]
    msk3 = pltpu.bitcast(packed[KK:], jnp.float32)[:, :, None]  # [KK, TN, 1]

    node = node_ref[...]                                       # [N, D] f32
    slab = param_ref[...]                                      # [Vp+2D+1, D]
    table = slab[:Vp]                                          # [Vp, D]
    wn = slab[Vp:Vp + D]                                       # [D, D]
    we = slab[Vp + D:Vp + 2 * D]                               # [D, D]
    bias = slab[Vp + 2 * D:]                                   # [1, D]

    # Masked one-hot scatter of all (in/out x node/edge) contributions with
    # the contribution axis LEADING -> the KK-reduction is plain VPU adds
    # across vregs (axis=0), not an XLU sublane reduce.
    iota = lax.broadcasted_iota(jnp.int32, (KK, TN, N + Vp), 2)
    M = jnp.sum(jnp.where(idx3 == iota, msk3, 0.0), axis=0)    # [TN, N+Vp]

    # Gather-then-weight: two accumulating matmuls on free lane-slices of M
    # (no sublane concat), then the shared Linear applied per half.  Matches
    # the reference association order exactly.
    Mq = M.astype(agg_dtype)
    agg_n = jnp.dot(Mq[:, :N], node.astype(agg_dtype),
                    preferred_element_type=jnp.float32)        # [TN, D]
    agg_e = jnp.dot(Mq[:, N:], table.astype(agg_dtype),
                    preferred_element_type=jnp.float32)        # [TN, D]

    # Residual rows of this block; bias appears once per side -> 2*bias.
    row0 = pl.multiple_of(pl.program_id(0) * TN, TN)
    node_rows = node_ref[pl.ds(row0, TN), :]                   # [TN, D]
    hid_ref[...] = (node_rows + 2.0 * bias
                    + jnp.dot(agg_n, wn, preferred_element_type=jnp.float32)
                    + jnp.dot(agg_e, we, preferred_element_type=jnp.float32))


# ---------------------------------------------------------------------------
# Hot-path forward (takes pre-packed slabs; no per-call packing ops)
# ---------------------------------------------------------------------------
def gcn_conv_forward_packed(node_reps, struct_slab, param_slab, *,
                            block_rows=None, agg_dtype=jnp.float32):
    """node_reps [1, N, D] + pre-packed slabs -> node_hidden [1, N, D]."""
    B, N, D = node_reps.shape
    assert B == 1, "reference module squeezes batch dim 0"
    node2d = node_reps[0].astype(jnp.float32)   # free reshape, no packing op

    KK2 = struct_slab.shape[0]
    assert struct_slab.shape[1] == N
    P = param_slab.shape[0]

    # Row-block tile: full N when small; 256-row blocks otherwise (multiple of
    # 128 so the lane-blocked struct slab and the M matmul stay aligned).
    tn = block_rows if block_rows is not None else (N if N <= 256 else 256)
    assert N % tn == 0, "pad the node count to a multiple of the row block"
    grid = (N // tn,)

    kernel = functools.partial(gcn_conv_kernel, agg_dtype=agg_dtype)
    out = pl.pallas_call(
        kernel,
        grid=grid,
        in_specs=[
            pl.BlockSpec((KK2, tn), lambda i: (0, i)),   # structure, per block
            pl.BlockSpec((N, D), lambda i: (0, 0)),      # full node reps (resident)
            pl.BlockSpec((P, D), lambda i: (0, 0)),      # params (resident)
        ],
        out_specs=pl.BlockSpec((tn, D), lambda i: (i, 0)),
        out_shape=jax.ShapeDtypeStruct((N, D), jnp.float32),
        compiler_params=pltpu.CompilerParams(
            # Row blocks are independent -> v7x's two TCs split the grid.
            dimension_semantics=("parallel",),
            # The VMEM hazard is the 3-D one-hot [KK, tn, N+Vp] f32 (KK x
            # larger than M).  With tn <= 256 it is ~KK*256*(N+Vp)*4 B per
            # block; shrink tn / use agg_dtype=bf16 / switch to the
            # scalar-prefetch gather formulation before raising this limit.
            vmem_limit_bytes=32 * 1024 * 1024),
    )(struct_slab, node2d, param_slab)
    return out[None]                                     # [1, N, D]


def gcn_conv_forward(node_reps, edge_table,
                     in_indices, in_edges, in_mask,
                     out_indices, out_edges, out_mask,
                     lin_weight, lin_bias, **kwargs):
    """Convenience wrapper.  In a real model call pack_gcn_* ONCE per graph /
    per weight update and use gcn_conv_forward_packed in the step loop."""
    N = node_reps.shape[1]
    struct_slab = pack_gcn_structure(in_indices, in_edges, in_mask,
                                     out_indices, out_edges, out_mask, N)
    param_slab = pack_gcn_params(edge_table, lin_weight, lin_bias)
    return gcn_conv_forward_packed(node_reps, struct_slab, param_slab, **kwargs)


# ---------------------------------------------------------------------------
# Pure-JAX mirror of the PyTorch forward (eval mode) for verification
# ---------------------------------------------------------------------------
def gcn_conv_reference(node_reps, edge_table,
                       in_indices, in_edges, in_mask,
                       out_indices, out_edges, out_mask,
                       lin_weight, lin_bias):
    def side(idx, edg, msk):
        nbr = node_reps[0][idx]                               # [N, K, D]
        edge_reps = edge_table[edg]                           # [N, K, E]
        reps = jnp.concatenate([nbr, edge_reps], axis=-1)     # [N, K, D+E]
        reps = reps * msk[..., None]
        reps = reps.sum(axis=1)                               # [N, D+E]
        return reps @ lin_weight.T + lin_bias                 # [N, D]
    in_nodes = side(in_indices, in_edges, in_mask)
    out_nodes = side(out_indices, out_edges, out_mask)
    return node_reps + out_nodes + in_nodes


if __name__ == "__main__":
    # Small synthetic config (args): embed_dim=32, edge_vocab_size=8.
    N, D, K, V = 16, 32, 4, 8

    key = jax.random.PRNGKey(0)
    keys = jax.random.split(key, 10)

    node_reps = jax.random.normal(keys[0], (1, N, D), jnp.float32)
    edge_table = jax.random.normal(keys[1], (V, D), jnp.float32) * 0.1       # nn.Embedding
    lin_weight = jax.random.normal(keys[2], (D, 2 * D), jnp.float32) * 0.05  # nn.Linear(D+E, D)
    lin_bias = jax.random.normal(keys[3], (D,), jnp.float32) * 0.01

    in_indices = jax.random.randint(keys[4], (N, K), 0, N, jnp.int32)
    in_edges = jax.random.randint(keys[5], (N, K), 0, V, jnp.int32)
    in_mask = (jax.random.uniform(keys[6], (N, K)) < 0.8).astype(jnp.float32)
    out_indices = jax.random.randint(keys[7], (N, K), 0, N, jnp.int32)
    out_edges = jax.random.randint(keys[8], (N, K), 0, V, jnp.int32)
    out_mask = (jax.random.uniform(keys[9], (N, K)) < 0.8).astype(jnp.float32)

    # Hoisted packing: done once, outside the per-forward hot path.
    struct_slab = jax.block_until_ready(
        pack_gcn_structure(in_indices, in_edges, in_mask,
                           out_indices, out_edges, out_mask, N))
    param_slab = jax.block_until_ready(
        pack_gcn_params(edge_table, lin_weight, lin_bias))

    fwd = jax.jit(gcn_conv_forward_packed)
    node_hidden = jax.block_until_ready(fwd(node_reps, struct_slab, param_slab))

    ref = gcn_conv_reference(node_reps, edge_table,
                             in_indices, in_edges, in_mask,
                             out_indices, out_edges, out_mask,
                             lin_weight, lin_bias)
    np.testing.assert_allclose(np.asarray(node_hidden), np.asarray(ref),
                               rtol=1e-2, atol=1e-2)

    assert node_hidden.shape == (1, N, D)
    print("KERNEL_OK")
</pallas_src>

<mosaic_0001>
module attributes {stable_mosaic.version = 11 : i64} {
  func.func @gcn_conv_kernel(%arg0: i32, %arg1: memref<32x16xi32, #tpu.memory_space<vmem>>, %arg2: memref<16x32xf32, #tpu.memory_space<vmem>>, %arg3: memref<73x32xf32, #tpu.memory_space<vmem>>, %arg4: memref<16x32xf32, #tpu.memory_space<vmem>>) attributes {dimension_semantics = [#tpu.dimension_semantics<parallel>], iteration_bounds = array<i64: 1>, scalar_prefetch = 0 : i64, scratch_operands = 0 : i64, tpu.core_type = #tpu.core_type<tc>, window_params = [{transform_indices = @transform_0, window_bounds = array<i64: 32, 16>}, {pipeline_mode = #tpu.pipeline_mode<synchronous>, transform_indices = @transform_1, window_bounds = array<i64: 16, 32>}, {pipeline_mode = #tpu.pipeline_mode<synchronous>, transform_indices = @transform_2, window_bounds = array<i64: 73, 32>}, {transform_indices = @transform_3, window_bounds = array<i64: 16, 32>}]} {
    %c0 = arith.constant 0 : index
    %c0_0 = arith.constant 0 : index
    %0 = vector.load %arg1[%c0, %c0_0] : memref<32x16xi32, #tpu.memory_space<vmem>>, vector<32x16xi32>
    %1 = vector.extract_strided_slice %0 {offsets = [0, 0], sizes = [16, 16], strides = [1, 1]} : vector<32x16xi32> to vector<16x16xi32>
    %2 = vector.shape_cast %1 : vector<16x16xi32> to vector<16x16x1xi32>
    %3 = vector.extract_strided_slice %0 {offsets = [16, 0], sizes = [16, 16], strides = [1, 1]} : vector<32x16xi32> to vector<16x16xi32>
    %4 = tpu.bitcast %3 : vector<16x16xi32> -> vector<16x16xf32>
    %5 = vector.shape_cast %4 : vector<16x16xf32> to vector<16x16x1xf32>
    %c0_1 = arith.constant 0 : index
    %c0_2 = arith.constant 0 : index
    %6 = vector.load %arg2[%c0_1, %c0_2] : memref<16x32xf32, #tpu.memory_space<vmem>>, vector<16x32xf32>
    %c0_3 = arith.constant 0 : index
    %c0_4 = arith.constant 0 : index
    %7 = vector.load %arg3[%c0_3, %c0_4] : memref<73x32xf32, #tpu.memory_space<vmem>>, vector<73x32xf32>
    %8 = vector.extract_strided_slice %7 {offsets = [0, 0], sizes = [8, 32], strides = [1, 1]} : vector<73x32xf32> to vector<8x32xf32>
    %9 = vector.extract_strided_slice %7 {offsets = [8, 0], sizes = [32, 32], strides = [1, 1]} : vector<73x32xf32> to vector<32x32xf32>
    %10 = vector.extract_strided_slice %7 {offsets = [40, 0], sizes = [32, 32], strides = [1, 1]} : vector<73x32xf32> to vector<32x32xf32>
    %11 = vector.extract_strided_slice %7 {offsets = [72, 0], sizes = [1, 32], strides = [1, 1]} : vector<73x32xf32> to vector<1x32xf32>
    %12 = tpu.iota {dimensions = array<i32: 2>} : vector<16x16x24xi32>
    %13 = vector.broadcast %2 : vector<16x16x1xi32> to vector<16x16x24xi32>
    %14 = arith.cmpi eq, %13, %12 : vector<16x16x24xi32>
    %cst = arith.constant 0.000000e+00 : f32
    %15 = vector.shape_cast %5 : vector<16x16x1xf32> to vector<16x16x1xf32>
    %16 = vector.broadcast %15 : vector<16x16x1xf32> to vector<16x16x24xf32>
    %17 = vector.broadcast %cst : f32 to vector<16x16x24xf32>
    %18 = arith.select %14, %16, %17 : vector<16x16x24xi1>, vector<16x16x24xf32>
    %cst_5 = arith.constant dense<0.000000e+00> : vector<16x24xf32>
    %19 = vector.multi_reduction <add>, %18, %cst_5 [0] : vector<16x16x24xf32> to vector<16x24xf32>
    %20 = vector.extract_strided_slice %19 {offsets = [0, 0], sizes = [16, 16], strides = [1, 1]} : vector<16x24xf32> to vector<16x16xf32>
    %cst_6 = arith.constant dense<0.000000e+00> : vector<16x32xf32>
    %21 = tpu.matmul %20, %6, %cst_6 {dimension_numbers = #tpu.dot_dimension_numbers<[1], [0], [0], [1], [0, 0, 1, 1], [], []>} : vector<16x16xf32>, vector<16x32xf32>, vector<16x32xf32> -> vector<16x32xf32>
    %22 = vector.extract_strided_slice %19 {offsets = [0, 16], sizes = [16, 8], strides = [1, 1]} : vector<16x24xf32> to vector<16x8xf32>
    %cst_7 = arith.constant dense<0.000000e+00> : vector<16x32xf32>
    %23 = tpu.matmul %22, %8, %cst_7 {dimension_numbers = #tpu.dot_dimension_numbers<[1], [0], [0], [1], [0, 0, 1, 1], [], []>} : vector<16x8xf32>, vector<8x32xf32>, vector<16x32xf32> -> vector<16x32xf32>
    %c16_i32 = arith.constant 16 : i32
    %24 = arith.muli %arg0, %c16_i32 : i32
    %25 = tpu.assume_multiple %24, 16 : i32
    %26 = arith.index_cast %25 : i32 to index
    %c0_8 = arith.constant 0 : index
    %27 = vector.load %arg2[%26, %c0_8] : memref<16x32xf32, #tpu.memory_space<vmem>>, vector<16x32xf32>
    %cst_9 = arith.constant 2.000000e+00 : f32
    %28 = vector.broadcast %cst_9 : f32 to vector<1x32xf32>
    %29 = arith.mulf %28, %11 : vector<1x32xf32>
    %30 = vector.broadcast %29 : vector<1x32xf32> to vector<16x32xf32>
    %31 = arith.addf %27, %30 : vector<16x32xf32>
    %cst_10 = arith.constant dense<0.000000e+00> : vector<16x32xf32>
    %32 = tpu.matmul %21, %9, %cst_10 {dimension_numbers = #tpu.dot_dimension_numbers<[1], [0], [0], [1], [0, 0, 1, 1], [], []>} : vector<16x32xf32>, vector<32x32xf32>, vector<16x32xf32> -> vector<16x32xf32>
    %33 = arith.addf %31, %32 : vector<16x32xf32>
    %cst_11 = arith.constant dense<0.000000e+00> : vector<16x32xf32>
    %34 = tpu.matmul %23, %10, %cst_11 {dimension_numbers = #tpu.dot_dimension_numbers<[1], [0], [0], [1], [0, 0, 1, 1], [], []>} : vector<16x32xf32>, vector<32x32xf32>, vector<16x32xf32> -> vector<16x32xf32>
    %35 = arith.addf %33, %34 : vector<16x32xf32>
    %c0_12 = arith.constant 0 : index
    %c0_13 = arith.constant 0 : index
    %36 = vector.load %arg4[%c0_12, %c0_13] : memref<16x32xf32, #tpu.memory_space<vmem>>, vector<16x32xf32>
    tpu.vector_store %arg4[%c0_12, %c0_13], %35 {strides = array<i32>} : memref<16x32xf32, #tpu.memory_space<vmem>>, vector<16x32xf32>,
    return
  }
  func.func @transform_0(%arg0: i32) -> (i32, i32) {
    %c0_i32 = arith.constant 0 : i32
    %c0_i32_0 = arith.constant 0 : i32
    return %c0_i32, %arg0 : i32, i32
  }
  func.func @transform_1(%arg0: i32) -> (i32, i32) {
    %c0_i32 = arith.constant 0 : i32
    %c0_i32_0 = arith.constant 0 : i32
    %c0_i32_1 = arith.constant 0 : i32
    return %c0_i32, %c0_i32_0 : i32, i32
  }
  func.func @transform_2(%arg0: i32) -> (i32, i32) {
    %c0_i32 = arith.constant 0 : i32
    %c0_i32_0 = arith.constant 0 : i32
    %c0_i32_1 = arith.constant 0 : i32
    return %c0_i32, %c0_i32_0 : i32, i32
  }
  func.func @transform_3(%arg0: i32) -> (i32, i32) {
    %c0_i32 = arith.constant 0 : i32
    %c0_i32_0 = arith.constant 0 : i32
    return %arg0, %c0_i32 : i32, i32
  }
}

</mosaic_0001>

<bundles_post_ra>
// kernel: gcn_conv_forward_packed.1
= control target key start
LH: loop header
LB: loop body
LE: loop exit
PB: predicated region body
PF: predicated region fallthrough
CT: control target
= control target key end

     0   :  { %v20_v0 = vlaneseq  ;;  %s1076_s0 = inlined_call_operand.vmem [shape: s32[32,16], index: 0, kind: input, shape index: {}]   ;;  %s1077_s1 = inlined_call_operand.vmem [shape: f32[16,32], index: 1, kind: input, shape index: {}]   ;;  %s1078_s2 = inlined_call_operand.vmem [shape: f32[73,32], index: 2, kind: input, shape index: {}]   ;;  %s1079_s3 = inlined_call_operand.hbm [shape: f32[16,32], index: 3, kind: output, shape index: {}]  }
   0x1   :  { %8 = vsyncpa [#allocation3], 0  ;;  %v824_v2 = vld [vmem:[%s1076_s0 + $0x10] sm:$0xff]  ;;  %v829_v3 = vld [vmem:[%s1076_s0] sm:$0xff]  ;;  %vm515_vm2 = vcmask 195584   ;;  %s792_s16 = smov [#allocation2]  }
   0x2   :  { %v816_v1 = vshrl.u32 %v20_v0, 7  ;;  %v242_v4 = vperm.slane %v824_v2, 1  ;;  %v32_v5 = vperm.slane %v829_v3, 1  ;;  %v19_v6 = vperm.slane %v829_v3, 0  ;;  %v843_v13 = vld [vmem:[%s1076_s0 + $0x18] sm:$0xff]  ;;  %v851_v17 = vld [vmem:[%s1076_s0 + $0x8] sm:$0xff] }
   0x3   :  { %v45_v7 = vperm.slane %v829_v3, 2  ;;  %v229_v8 = vperm.slane %v824_v2, 0  ;;  %v268_v9 = vperm.slane %v824_v2, 3  ;;  %v58_v10 = vperm.slane %v829_v3, 3  ;;  %s717_s17 = sshll.u32 %s792_s16, 4  ;;  %s719_s0 = sshll.u32 %s1079_s3, 4  ;;  %s718_s17 = int_to_ptr.vmem [resolvable:$true] %s717_s17  ;;  %s720_s0 = int_to_ptr.hbm [resolvable:$true] %s719_s0 }
   0x4   :  { %745 = vset.pattern.permute.xlu2 %v816_v1  ;;  %744 = vset.pattern.permute.xlu1 %v816_v1  ;;  %v255_v11 = vperm.slane %v824_v2, 2  ;;  %v110_v12 = vperm.slane %v829_v3, 7  ;;  %v281_v14 = vperm.slane %v824_v2, 4  ;;  %v71_v15 = vperm.slane %v829_v3, 4  ;;  %s794_s20 = smov 8  }
   0x5   :  { %743 = vset.pattern.permute.xlu0 %v816_v1  ;;  %v346_v16 = vperm.slane %v843_v13, 1  ;;  %v84_v18 = vperm.slane %v829_v3, 5  ;;  %v855_v19 = vadd.s32 8, %v816_v1  ;;  %v175_v20 = vperm.slane %v851_v17, 4 }
   0x6   :  { %v294_v21 = vperm.slane %v824_v2, 5  ;;  %v411_v22 = vperm.slane %v843_v13, 6  ;;  %v97_v23 = vperm.slane %v829_v3, 6  ;;  %v307_v24 = vperm.slane %v824_v2, 6 }
   0x7   :  { %v320_v25 = vperm.slane %v824_v2, 7  ;;  %v123_v26 = vperm.slane %v851_v17, 0  ;;  %v333_v30 = vperm.slane %v843_v13, 0  ;;  %v882_v31 = vand.u32 127, %v20_v0 }
   0x8   :  { %v136_v36 = vperm.slane %v851_v17, 1  ;;  %v149_v43 = vperm.slane %v851_v17, 2  ;;  %v359_v52 = vperm.slane %v843_v13, 2  ;;  %v162_v3 = vperm.slane %v851_v17, 3 }
   0x9   :  { %v372_v2 = vperm.slane %v843_v13, 3 }
   0xc   :  { %247 = vperm.xlu2 %745, %v242_v4   ;;  %37 = vperm.xlu1 %744, %v32_v5  }
   0xd   :  { %24 = vperm.xlu0 %743, %v19_v6  }
  0x14   :  { %50 = vperm.xlu2 %745, %v45_v7   ;;  %234 = vperm.xlu1 %744, %v229_v8  }
  0x15   :  { %273 = vperm.xlu0 %743, %v268_v9  }
  0x1c   :  { %63 = vperm.xlu2 %745, %v58_v10   ;;  %260 = vperm.xlu1 %744, %v255_v11  }
  0x1d   :  { %115 = vperm.xlu0 %743, %v110_v12  }
  0x24   :  { %286 = vperm.xlu2 %745, %v281_v14   ;;  %76 = vperm.xlu1 %744, %v71_v15  }
  0x25   :  { %351 = vperm.xlu0 %743, %v346_v16  }
  0x2c   :  { %89 = vperm.xlu2 %745, %v84_v18   ;;  %746 = vset.pattern.permute.xlu1 %v855_v19 }
  0x2d   :  { %180 = vperm.xlu0 %743, %v175_v20  }
  0x34   :  { %299 = vperm.xlu2 %745, %v294_v21   ;;  %43 = vperm.xlu1 %746, %v32_v5  }
  0x35   :  { %416 = vperm.xlu0 %743, %v411_v22  }
  0x3c   :  { %102 = vperm.xlu2 %745, %v97_v23   ;;  %253 = vperm.xlu1 %746, %v242_v4  }
  0x3d   :  { %761 = vset.pattern.permute.xlu0 %v855_v19 }
  0x44   :  { %748 = vset.pattern.permute.xlu2 %v855_v19  ;;  %56 = vperm.xlu1 %746, %v45_v7  }
  0x45   :  { %30 = vperm.xlu0 %761, %v19_v6  }
  0x4c   :  { %69 = vperm.xlu2 %748, %v58_v10   ;;  %747 = vset.pattern.permute.xlu1 %v816_v1  ;;  %v385_v10 = vperm.slane %v843_v13, 4 }
  0x4d   :  { %240 = vperm.xlu0 %761, %v229_v8  }
  0x54   :  { %750 = vset.pattern.permute.xlu2 %v816_v1  ;;  %312 = vperm.xlu1 %747, %v307_v24  }
  0x55   :  { %266 = vperm.xlu0 %761, %v255_v11  }
  0x5c   :  { %325 = vperm.xlu2 %750, %v320_v25   ;;  %749 = vset.pattern.permute.xlu1 %v855_v19 }
  0x5d   :  { %292 = vperm.xlu0 %761, %v281_v14  }
  0x64   :  { %128 = vperm.xlu2 %750, %v123_v26   ;;  %279 = vperm.xlu1 %749, %v268_v9  }
  0x65   :  { %121 = vperm.xlu0 %761, %v110_v12  }
  0x66   :  { %v248_v27 = vpop.permute.xlu2 %247 }
  0x6c   :  { %752 = vset.pattern.permute.xlu2 %v855_v19  ;;  %82 = vperm.xlu1 %749, %v71_v15   ;;  %v188_v15 = vperm.slane %v851_v17, 5 }
  0x6d   :  { %357 = vperm.xlu0 %761, %v346_v16  }
  0x6e   :  { %v51_v28 = vpop.permute.xlu2 %50 }
  0x6f   :  { %vm455_vm3 = vcmp.eq.s32.totalorder %v51_v28, %v882_v31 }
  0x74   :  { %95 = vperm.xlu2 %752, %v84_v18   ;;  %751 = vset.pattern.permute.xlu1 %v816_v1 }
  0x75   :  { %186 = vperm.xlu0 %761, %v175_v20  }
  0x76   :  { %v64_v29 = vpop.permute.xlu2 %63 }
  0x77   :  { %vm457_vm4 = vcmp.eq.s32.totalorder %v64_v29, %v882_v31 }
  0x7c   :  { %305 = vperm.xlu2 %752, %v294_v21   ;;  %338 = vperm.xlu1 %751, %v333_v30  }
  0x7d   :  { %422 = vperm.xlu0 %761, %v411_v22  }
  0x7e   :  { %v287_v32 = vpop.permute.xlu2 %286  ;;  %v38_v33 = vpop.permute.xlu1 %37 }
  0x7f   :  { %vm453_vm0 = vcmp.eq.s32.totalorder %v38_v33, %v882_v31  ;;  %v25_v34 = vpop.permute.xlu0 %24 }
  0x80   :  { %v485_v35 = vsel %vm453_vm0, %v248_v27, 0.0  ;;  %vm451_vm1 = vcmp.eq.s32.totalorder %v25_v34, %v882_v31 }
  0x81   :  { %v517_v41 = vsel %vm515_vm2, %v485_v35, 0.0 }
  0x84   :  { %754 = vset.pattern.permute.xlu2 %v816_v1  ;;  %141 = vperm.xlu1 %751, %v136_v36  }
  0x86   :  { %v90_v37 = vpop.permute.xlu2 %89  ;;  %v235_v38 = vpop.permute.xlu1 %234 }
  0x87   :  { %v483_v39 = vsel %vm451_vm1, %v235_v38, 0.0  ;;  %v274_v40 = vpop.permute.xlu0 %273  ;;  %vm461_vm5 = vcmp.eq.s32.totalorder %v90_v37, %v882_v31 }
  0x88   :  { %v516_v42 = vsel %vm515_vm2, %v483_v39, 0.0  ;;  %v489_v47 = vsel %vm457_vm4, %v274_v40, 0.0 }
  0x89   :  { %v518_v44 = vadd.f32 %v517_v41, %v516_v42  ;;  %v521_v54 = vsel %vm515_vm2, %v489_v47, 0.0  ;;  %v398_v42 = vperm.slane %v843_v13, 5 }
  0x8c   :  { %154 = vperm.xlu2 %754, %v149_v43   ;;  %753 = vset.pattern.permute.xlu1 %v855_v19 }
  0x8e   :  { %v300_v45 = vpop.permute.xlu2 %299  ;;  %v261_v46 = vpop.permute.xlu1 %260 }
  0x8f   :  { %v493_v48 = vsel %vm461_vm5, %v300_v45, 0.0  ;;  %v487_v49 = vsel %vm455_vm3, %v261_v46, 0.0  ;;  %v116_v50 = vpop.permute.xlu0 %115  ;;  %v201_v46 = vperm.slane %v851_v17, 6 }
  0x90   :  { %v519_v51 = vsel %vm515_vm2, %v487_v49, 0.0  ;;  %v525_v61 = vsel %vm515_vm2, %v493_v48, 0.0  ;;  %vm465_vm9 = vcmp.eq.s32.totalorder %v116_v50, %v882_v31 }
  0x91   :  { %v520_v53 = vadd.f32 %v519_v51, %v518_v44  ;;  %v214_v51 = vperm.slane %v851_v17, 7 }
  0x93   :  { %v522_v55 = vadd.f32 %v521_v54, %v520_v53 }
  0x94   :  { %364 = vperm.xlu2 %754, %v359_v52   ;;  %108 = vperm.xlu1 %753, %v97_v23  }
  0x96   :  { %v77_v56 = vpop.permute.xlu1 %76  ;;  %v103_v4 = vpop.permute.xlu2 %102 }
  0x97   :  { %vm459_vm6 = vcmp.eq.s32.totalorder %v77_v56, %v882_v31  ;;  %v910_v59 = vpop.permute.xlu0 %351  ;;  %vm463_vm10 = vcmp.eq.s32.totalorder %v103_v4, %v882_v31 }
  0x98   :  { %v491_v57 = vsel %vm459_vm6, %v287_v32, 0.0 }
  0x99   :  { %v523_v58 = vsel %vm515_vm2, %v491_v57, 0.0 }
  0x9a   :  { %v524_v60 = vadd.f32 %v523_v58, %v522_v55  ;;  %v424_v55 = vperm.slane %v843_v13, 7 }
  0x9c   :  { %756 = vset.pattern.permute.xlu2 %v855_v19  ;;  %318 = vperm.xlu1 %753, %v307_v24   ;;  %v526_v62 = vadd.f32 %v525_v61, %v524_v60 }
  0x9f   :  { %v916_v63 = vpop.permute.xlu0 %180 }
  0xa4   :  { %331 = vperm.xlu2 %756, %v320_v25   ;;  %755 = vset.pattern.permute.xlu1 %v816_v1 }
  0xa6   :  { %v44_v0 = vpop.permute.xlu1 %43  ;;  %v70_v8 = vpop.permute.xlu2 %69 }
  0xa7   :  { %v926_v5 = vpop.permute.xlu0 %416  ;;  %vm454_vm7 = vcmp.eq.s32.totalorder %v44_v0, %v882_v31  ;;  %vm458_vm13 = vcmp.eq.s32.totalorder %v70_v8, %v882_v31 }
  0xac   :  { %134 = vperm.xlu2 %756, %v123_v26   ;;  %167 = vperm.xlu1 %755, %v162_v3  }
  0xae   :  { %v254_v6 = vpop.permute.xlu1 %253 }
  0xaf   :  { %v486_v7 = vsel %vm454_vm7, %v254_v6, 0.0  ;;  %vm475_vm7 = vcmp.eq.s32.totalorder %v916_v63, %v882_v31 }
  0xb0   :  { %v548_v23 = vsel %vm515_vm2, %v486_v7, 0.0 }
  0xb4   :  { %758 = vset.pattern.permute.xlu2 %v816_v1  ;;  %377 = vperm.xlu1 %755, %v372_v2  }
  0xb6   :  { %v326_v11 = vpop.permute.xlu2 %325  ;;  %v57_v12 = vpop.permute.xlu1 %56 }
  0xb7   :  { %v31_v9 = vpop.permute.xlu0 %30  ;;  %v497_v20 = vsel %vm465_vm9, %v326_v11, 0.0  ;;  %vm456_vm11 = vcmp.eq.s32.totalorder %v57_v12, %v882_v31 }
  0xb8   :  { %vm452_vm8 = vcmp.eq.s32.totalorder %v31_v9, %v882_v31  ;;  %v529_v29 = vsel %vm515_vm2, %v497_v20, 0.0  ;;  %v996_v20 = vld [vmem:[%s1077_s1] sm:$0xff] }
  0xbc   :  { %390 = vperm.xlu2 %758, %v385_v10   ;;  %757 = vset.pattern.permute.xlu1 %v855_v19 }
  0xbe   :  { %v129_v22 = vpop.permute.xlu2 %128 }
  0xbf   :  { %v241_v14 = vpop.permute.xlu0 %240  ;;  %vm467_vm15 = vcmp.eq.s32.totalorder %v129_v22, %v882_v31 }
  0xc0   :  { %v484_v16 = vsel %vm452_vm8, %v241_v14, 0.0 }
  0xc1   :  { %v547_v18 = vsel %vm515_vm2, %v484_v16, 0.0 }
  0xc2   :  { %v549_v26 = vadd.f32 %v548_v23, %v547_v18  ;;  %v991_v18 = vld [vmem:[%s1077_s1 + $0x8] sm:$0xff]  ;;  %s791_s1 = smov 112  }
  0xc3   :  { %599 = vmatpush.msra.mxu0 %v991_v18 }
  0xc4   :  { %193 = vperm.xlu2 %758, %v188_v15   ;;  %344 = vperm.xlu1 %757, %v333_v30  }
  0xc5   :  { %600 = vmatpush.msra.mxu0 %v996_v20 }
  0xc6   :  { %v313_v21 = vpop.permute.xlu1 %312 }
  0xc7   :  { %v495_v24 = vsel %vm463_vm10, %v313_v21, 0.0  ;;  %v267_v25 = vpop.permute.xlu0 %266 }
  0xc8   :  { %v527_v27 = vsel %vm515_vm2, %v495_v24, 0.0  ;;  %v488_v28 = vsel %vm456_vm11, %v267_v25, 0.0  ;;  %vm578_vm11 = vcmask 130048  }
  0xc9   :  { %v528_v30 = vadd.f32 %v527_v27, %v526_v62  ;;  %v550_v32 = vsel %vm515_vm2, %v488_v28, 0.0 }
  0xca   :  { %v551_v33 = vadd.f32 %v550_v32, %v549_v26 }
  0xcb   :  { %v530_v34 = vadd.f32 %v529_v29, %v528_v30 }
  0xcc   :  { %760 = vset.pattern.permute.xlu2 %v855_v19  ;;  %147 = vperm.xlu1 %757, %v136_v36  }
  0xce   :  { %v96_v35 = vpop.permute.xlu2 %95 }
  0xcf   :  { %vm462_vm12 = vcmp.eq.s32.totalorder %v96_v35, %v882_v31  ;;  %v293_v36 = vpop.permute.xlu0 %292 }
  0xd4   :  { %160 = vperm.xlu2 %760, %v149_v43   ;;  %759 = vset.pattern.permute.xlu1 %v816_v1 }
  0xd6   :  { %v280_v37 = vpop.permute.xlu1 %279  ;;  %v306_v38 = vpop.permute.xlu2 %305 }
  0xd7   :  { %v490_v39 = vsel %vm458_vm13, %v280_v37, 0.0  ;;  %v494_v40 = vsel %vm462_vm12, %v306_v38, 0.0  ;;  %v122_v61 = vpop.permute.xlu0 %121 }
  0xd8   :  { %v552_v41 = vsel %vm515_vm2, %v490_v39, 0.0  ;;  %v556_v48 = vsel %vm515_vm2, %v494_v40, 0.0  ;;  %vm466_vm0 = vcmp.eq.s32.totalorder %v122_v61, %v882_v31 }
  0xd9   :  { %v553_v44 = vadd.f32 %v552_v41, %v551_v33 }
  0xdc   :  { %370 = vperm.xlu2 %760, %v359_v52   ;;  %403 = vperm.xlu1 %759, %v398_v42  }
  0xde   :  { %v83_v43 = vpop.permute.xlu1 %82 }
  0xdf   :  { %vm460_vm14 = vcmp.eq.s32.totalorder %v83_v43, %v882_v31 }
  0xe0   :  { %v492_v45 = vsel %vm460_vm14, %v293_v36, 0.0 }
  0xe1   :  { %v554_v47 = vsel %vm515_vm2, %v492_v45, 0.0 }
  0xe2   :  { %v555_v49 = vadd.f32 %v554_v47, %v553_v44 }
  0xe4   :  { %v557_v50 = vadd.f32 %v556_v48, %v555_v49  ;;  %763 = vset.pattern.permute.xlu2 %v816_v1  ;;  %206 = vperm.xlu1 %759, %v201_v46   ;;  %v439_v48 = vld [vmem:[%s1078_s2] sm:$0xff] }
  0xe5   :  { %632 = vmatpush.msra.mxu1 %v439_v48 }
  0xe6   :  { %v155_v1 = vpop.permute.xlu2 %154 }
  0xe7   :  { %vm471_vm5 = vcmp.eq.s32.totalorder %v155_v1, %v882_v31 }
  0xec   :  { %219 = vperm.xlu2 %763, %v214_v51   ;;  %762 = vset.pattern.permute.xlu1 %v855_v19 }
  0xee   :  { %v339_v52 = vpop.permute.xlu1 %338  ;;  %v365_v58 = vpop.permute.xlu2 %364 }
  0xef   :  { %v499_v53 = vsel %vm467_vm15, %v339_v52, 0.0  ;;  %v503_v25 = vsel %vm471_vm5, %v365_v58, 0.0 }
  0xf0   :  { %v531_v54 = vsel %vm515_vm2, %v499_v53, 0.0  ;;  %v535_v29 = vsel %vm515_vm2, %v503_v25, 0.0  ;;  %v447_v25 = vld [vmem:[%s1078_s2 + $0x40] sm:$0xff] }
  0xf1   :  { %v532_v56 = vadd.f32 %v531_v54, %v530_v34  ;;  %698 = vmatpush.msra.mxu3 %v447_v25 }
  0xf4   :  { %429 = vperm.xlu2 %763, %v424_v55   ;;  %173 = vperm.xlu1 %762, %v162_v3  }
  0xf6   :  { %v142_v57 = vpop.permute.xlu1 %141 }
  0xf7   :  { %vm469_vm4 = vcmp.eq.s32.totalorder %v142_v57, %v882_v31 }
  0xf8   :  { %v501_v22 = vsel %vm469_vm4, %v910_v59, 0.0  ;;  %vm648_vm4 = vcmask 261120  }
  0xf9   :  { %v533_v24 = vsel %vm515_vm2, %v501_v22, 0.0  ;;  %v440_v22 = vld [vmem:[%s1078_s2 + $0x8] sm:$0xff] }
  0xfa   :  { %v534_v27 = vadd.f32 %v533_v24, %v532_v56 }
  0xfc   :  { %764 = vset.pattern.permute.xlu2 %v855_v19  ;;  %383 = vperm.xlu1 %762, %v372_v2   ;;  %v536_v59 = vadd.f32 %v535_v29, %v534_v27  ;;  %v445_v27 = vld [vmem:[%s1078_s2 + $0x30] sm:$0xff] }
  0xfe   :  { %v332_v62 = vpop.permute.xlu2 %331 }
  0xff   :  { %v498_v0 = vsel %vm466_vm0, %v332_v62, 0.0 }
 0x100   :  { %v560_v17 = vsel %vm515_vm2, %v498_v0, 0.0 }
 0x104   :  { %199 = vperm.xlu2 %764, %v188_v15   ;;  %396 = vperm.xlu1 %762, %v385_v10  }
 0x106   :  { %v109_v60 = vpop.permute.xlu1 %108  ;;  %v135_v13 = vpop.permute.xlu2 %134 }
 0x107   :  { %vm464_vm1 = vcmp.eq.s32.totalorder %v109_v60, %v882_v31  ;;  %vm468_vm3 = vcmp.eq.s32.totalorder %v135_v13, %v882_v31 }
 0x10c   :  { %212 = vperm.xlu2 %764, %v201_v46   ;;  %409 = vperm.xlu1 %762, %v398_v42  }
 0x10e   :  { %v319_v19 = vpop.permute.xlu1 %318 }
 0x10f   :  { %v496_v3 = vsel %vm464_vm1, %v319_v19, 0.0 }
 0x110   :  { %v558_v4 = vsel %vm515_vm2, %v496_v3, 0.0 }
 0x111   :  { %v559_v6 = vadd.f32 %v558_v4, %v557_v50 }
 0x113   :  { %v561_v7 = vadd.f32 %v560_v17, %v559_v6 }
 0x114   :  { %225 = vperm.xlu1 %762, %v214_v51   ;;  %435 = vperm.xlu2 %764, %v424_v55  }
 0x116   :  { %v391_v8 = vpop.permute.xlu2 %390 }
 0x117   :  { %v507_v33 = vsel %vm475_vm7, %v391_v8, 0.0 }
 0x118   :  { %v539_v37 = vsel %vm515_vm2, %v507_v33, 0.0  ;;  %v448_v33 = vld [vmem:[%s1078_s2 + $0x48] sm:$0x1] }
 0x11e   :  { %v168_v2 = vpop.permute.xlu1 %167  ;;  %v194_v10 = vpop.permute.xlu2 %193 }
 0x11f   :  { %vm473_vm6 = vcmp.eq.s32.totalorder %v168_v2, %v882_v31  ;;  %vm477_vm8 = vcmp.eq.s32.totalorder %v194_v10, %v882_v31 }
 0x126   :  { %v378_v9 = vpop.permute.xlu1 %377 }
 0x127   :  { %v505_v28 = vsel %vm473_vm6, %v378_v9, 0.0 }
 0x128   :  { %v537_v32 = vsel %vm515_vm2, %v505_v28, 0.0 }
 0x129   :  { %v538_v34 = vadd.f32 %v537_v32, %v536_v59 }
 0x12b   :  { %v540_v40 = vadd.f32 %v539_v37, %v538_v34  ;;  %v644_v34 = vmul.f32 2.0, %v448_v33 }
 0x12e   :  { %v161_v16 = vpop.permute.xlu2 %160 }
 0x12f   :  { %vm472_vm13 = vcmp.eq.s32.totalorder %v161_v16, %v882_v31  ;;  %v443_v16 = vld [vmem:[%s1078_s2 + $0x20] sm:$0xff] }
 0x130   :  { %667 = vmatpush.msra.mxu2 %v443_v16 }
 0x136   :  { %v345_v11 = vpop.permute.xlu1 %344  ;;  %v371_v21 = vpop.permute.xlu2 %370 }
 0x137   :  { %v500_v12 = vsel %vm468_vm3, %v345_v11, 0.0  ;;  %v504_v54 = vsel %vm472_vm13, %v371_v21, 0.0  ;;  %v442_v21 = vld [vmem:[%s1078_s2 + $0x18] sm:$0xff] }
 0x138   :  { %v562_v14 = vsel %vm515_vm2, %v500_v12, 0.0  ;;  %v566_v57 = vsel %vm515_vm2, %v504_v54, 0.0  ;;  %668 = vmatpush.msra.mxu2 %v442_v21 }
 0x139   :  { %v563_v15 = vadd.f32 %v562_v14, %v561_v7 }
 0x13e   :  { %v148_v23 = vpop.permute.xlu1 %147 }
 0x13f   :  { %vm470_vm12 = vcmp.eq.s32.totalorder %v148_v23, %v882_v31 }
 0x146   :  { %v220_v26 = vpop.permute.xlu2 %219 }
 0x147   :  { %vm481_vm9 = vcmp.eq.s32.totalorder %v220_v26, %v882_v31  ;;  %v446_v26 = vld [vmem:[%s1078_s2 + $0x38] sm:$0xff] }
 0x148   :  { %699 = vmatpush.msra.mxu3 %v446_v26 }
 0x14a   :  { %700 = vmatpush.msra.mxu3 %v445_v27 }
 0x14e   :  { %v404_v30 = vpop.permute.xlu1 %403  ;;  %v430_v39 = vpop.permute.xlu2 %429 }
 0x14f   :  { %v509_v35 = vsel %vm477_vm8, %v404_v30, 0.0  ;;  %v513_v41 = vsel %vm481_vm9, %v430_v39, 0.0  ;;  %v444_v30 = vld [vmem:[%s1078_s2 + $0x28] sm:$0xff] }
 0x150   :  { %v541_v38 = vsel %vm515_vm2, %v509_v35, 0.0  ;;  %v545_v36 = vsel %vm515_vm2, %v513_v41, 0.0  ;;  %701 = vmatpush.msra.mxu3 %v444_v30  ;;  %v645_v35 = vperm.slane %v644_v34, 0 }
 0x151   :  { %v542_v63 = vadd.f32 %v541_v38, %v540_v40 }
 0x152   :  { %v646_v37 = vadd.f32 %v645_v35, %v996_v20 }
 0x156   :  { %v207_v42 = vpop.permute.xlu1 %206 }
 0x157   :  { %vm479_vm10 = vcmp.eq.s32.totalorder %v207_v42, %v882_v31  ;;  %v647_v42 = vadd.f32 %v645_v35, %v991_v18 }
 0x158   :  { %v511_v44 = vsel %vm479_vm10, %v926_v5, 0.0  ;;  %v358_v5 = vpop.permute.xlu0 %357 }
 0x159   :  { %v543_v43 = vsel %vm515_vm2, %v511_v44, 0.0  ;;  %v502_v50 = vsel %vm470_vm12, %v358_v5, 0.0 }
 0x15a   :  { %v544_v45 = vadd.f32 %v543_v43, %v542_v63  ;;  %v564_v53 = vsel %vm515_vm2, %v502_v50, 0.0 }
 0x15b   :  { %v565_v56 = vadd.f32 %v564_v53, %v563_v15 }
 0x15c   :  { %v546_v46 = vadd.f32 %v545_v36, %v544_v45 }
 0x15d   :  { %v567_v61 = vadd.f32 %v566_v57, %v565_v56 }
 0x15e   :  { %608 = vrot.lane.b32.xlu0 %v546_v46, %s791_s1  ;;  %731 = vmatmul.msk.f32.vlgmr.msra.gmra.mxu0 %vm578_vm11, %v546_v46  ;;  %v200_v51 = vpop.permute.xlu2 %199 }
 0x15f   :  { %vm478_vm0 = vcmp.eq.s32.totalorder %v200_v51, %v882_v31 }
 0x160   :  { %v187_v55 = vpop.permute.xlu0 %186 }
 0x161   :  { %vm476_vm15 = vcmp.eq.s32.totalorder %v187_v55, %v882_v31 }
 0x166   :  { %v174_v47 = vpop.permute.xlu1 %173  ;;  %v213_v62 = vpop.permute.xlu2 %212 }
 0x167   :  { %vm474_vm14 = vcmp.eq.s32.totalorder %v174_v47, %v882_v31  ;;  %vm480_vm1 = vcmp.eq.s32.totalorder %v213_v62, %v882_v31 }
 0x168   :  { %v423_v7 = vpop.permute.xlu0 %422 }
 0x169   :  { %v512_v13 = vsel %vm480_vm1, %v423_v7, 0.0 }
 0x16a   :  { %v574_v9 = vsel %vm515_vm2, %v512_v13, 0.0 }
 0x16e   :  { %v384_v49 = vpop.permute.xlu1 %383  ;;  %v436_v10 = vpop.permute.xlu2 %435 }
 0x16f   :  { %v506_v1 = vsel %vm474_vm14, %v384_v49, 0.0 }
 0x170   :  { %v568_v60 = vsel %vm515_vm2, %v506_v1, 0.0 }
 0x171   :  { %v569_v4 = vadd.f32 %v568_v60, %v567_v61 }
 0x176   :  { %v397_v52 = vpop.permute.xlu1 %396 }
 0x177   :  { %v508_v58 = vsel %vm476_vm15, %v397_v52, 0.0 }
 0x178   :  { %v570_v19 = vsel %vm515_vm2, %v508_v58, 0.0 }
 0x179   :  { %v571_v6 = vadd.f32 %v570_v19, %v569_v4 }
 0x17e   :  { %v410_v0 = vpop.permute.xlu1 %409 }
 0x17f   :  { %v510_v3 = vsel %vm478_vm0, %v410_v0, 0.0 }
 0x180   :  { %v572_v17 = vsel %vm515_vm2, %v510_v3, 0.0 }
 0x181   :  { %v573_v2 = vadd.f32 %v572_v17, %v571_v6 }
 0x183   :  { %v575_v11 = vadd.f32 %v574_v9, %v573_v2 }
 0x186   :  { %v226_v8 = vpop.permute.xlu1 %225 }
 0x187   :  { %vm482_vm3 = vcmp.eq.s32.totalorder %v226_v8, %v882_v31  ;;  %v441_v31 = vld [vmem:[%s1078_s2 + $0x10] sm:$0xff]  ;;  %s793_s2 = smov 128  }
 0x188   :  { %v514_v12 = vsel %vm482_vm3, %v436_v10, 0.0  ;;  %669 = vmatpush.msra.mxu2 %v441_v31 }
 0x189   :  { %v576_v14 = vsel %vm515_vm2, %v514_v12, 0.0  ;;  %vm612_vm2 = vcmask 64512  }
 0x18a   :  { %v577_v15 = vadd.f32 %v576_v14, %v575_v11  ;;  %670 = vmatpush.msra.mxu2 %v440_v22 }
 0x18c   :  { %610 = vrot.lane.b32.xlu1 %v577_v15, %s791_s1  ;;  %732 = vmatmul.msk.f32.gmra.mxu0 %vm578_vm11, %v577_v15 }
 0x1d0   :  { %v609_v23 = vpop.permute.xlu0 %608 }
 0x1d1   :  { %733 = vmatmul.msk.f32.vlgmr.msra.gmra.mxu1 %vm612_vm2, %v609_v23 }
 0x1db   :  { %v602_v24 = vpop.f32.mrf.mxu0 }
 0x1dc   :  { %735 = vmatmul.msk.f32.vlgmr.msra.gmra.mxu2 %vm648_vm4, %v602_v24 }
 0x1fe   :  { %v611_v28 = vpop.permute.xlu1 %610 }
 0x1ff   :  { %734 = vmatmul.msk.f32.gmra.mxu1 %vm612_vm2, %v611_v28 }
 0x209   :  { %v605_v29 = vpop.f32.mrf.mxu0 }
 0x20a   :  { %736 = vmatmul.msk.f32.gmra.mxu2 %vm648_vm4, %v605_v29 }
 0x24e   :  { %v634_v32 = vpop.f32.mrf.mxu1 }
 0x24f   :  { %737 = vmatmul.msk.f32.vlgmr.msra.gmra.mxu3 %vm648_vm4, %v634_v32 }
 0x25f   :  { %v672_v38 = vpop.f32.mrf.mxu2 }
 0x260   :  { %v678_v39 = vadd.f32 %v672_v38, %v646_v37 }
 0x27c   :  { %v637_v59 = vpop.f32.mrf.mxu1 }
 0x27d   :  { %738 = vmatmul.msk.f32.gmra.mxu3 %vm648_vm4, %v637_v59 }
 0x28d   :  { %v675_v63 = vpop.f32.mrf.mxu2 }
 0x28e   :  { %v679_v44 = vadd.f32 %v675_v63, %v647_v42 }
 0x2d2   :  { %v703_v40 = vpop.f32.mrf.mxu3 }
 0x2d3   :  { %v709_v41 = vadd.f32 %v703_v40, %v678_v39 }
 0x2d5   :  { %711 = vst.msk [vmem:[#allocation2] sm:$0xff] %vm648_vm4, %v709_v41 }
 0x300   :  { %v706_v36 = vpop.f32.mrf.mxu3 }
 0x301   :  { %v710_v20 = vadd.f32 %v706_v36, %v679_v44 }
 0x303   :  { %712 = vst.msk [vmem:[#allocation2 + $0x8] sm:$0xff] %vm648_vm4, %v710_v20 }
 0x304   :  { %725 = dma.vmem_to_hbm [thread:$0]  %s718_s17, 256, %s720_s0, [#allocation3], %s793_s2, %s793_s2, %s794_s20  }
 0x305   :  { %789 = dma.done.wait [#allocation3], 256  }
 0x306   :  { %790 = vsyncadd [#allocation3], 4294967040 }
 0x307   :  { %730 = vsyncpa [#allocation3], 1 }

</bundles_post_ra>
